<compile_context>
chip_gen: v5e
topology: v5e:2x2
jax: 0.10.0
libtpu: 0.0.40
codegen_flags: <defaults>
</compile_context>

<pallas_src>
import functools

import jax
import jax.numpy as jnp
from jax.experimental import pallas as pl
from jax.experimental.pallas import tpu as pltpu

_NEG_BIG = -1e30  # logit fill for padded lanes: exp underflows to 0, stays finite in f32


def _proden_kernel(ow_ref, os_ref, tgt_ref, newt_ref, part_ref, *,
                   num_classes, num_rows, mask_rows):
    tile_n, c_pad = ow_ref.shape

    ow = ow_ref[...].astype(jnp.float32)
    osr = os_ref[...].astype(jnp.float32)
    tgt = tgt_ref[...].astype(jnp.float32)

    # The logit blocks overhang the (N, C) arrays in the lane direction when C % 128 != 0,
    # so the tail lanes of the VMEM block are undefined: mask them before any use.
    if num_classes < c_pad:
        col = jax.lax.broadcasted_iota(jnp.int32, (tile_n, c_pad), 1)
        lane_ok = col < num_classes
        ow = jnp.where(lane_ok, ow, _NEG_BIG)
        osr = jnp.where(lane_ok, osr, _NEG_BIG)
        tgt = jnp.where(lane_ok, tgt, 0.0)  # defensive: padded confidence lanes are 0 anyway

    # Numerically-stable softmax + log-softmax sharing a single exp per element.
    # The divide is exact but runs once per ROW (tile_n values), never per element.
    def softmax_pair(x):
        m = jnp.max(x, axis=1, keepdims=True)
        z = x - m
        e = jnp.exp(z)
        s = jnp.sum(e, axis=1, keepdims=True)
        ls = z - jnp.log(s)            # log-softmax
        p = e * (1.0 / s)              # softmax, exact per-row reciprocal
        return ls, p

    ls_w, pred_w = softmax_pair(ow)
    ls_s, pred_s = softmax_pair(osr)

    pos = tgt > 0.0
    posf = pos.astype(jnp.float32)
    negf = 1.0 - posf

    # supervised negative-class loss; fused single log (same inf/NaN behavior as the reference)
    sup = negf * (-jnp.log((1.0 - pred_w) * (1.0 - pred_s)))

    # KL(target || softmax) for both branches fused: 2*xlogy(t,t) - t*(ls_w + ls_s)
    xlogy = jnp.where(pos, tgt * jnp.log(jnp.where(pos, tgt, 1.0)), 0.0)
    kl = 2.0 * xlogy - tgt * (ls_w + ls_s)

    contrib = sup + kl
    if mask_rows:
        # cdiv grid: the last tile overhangs the batch; its garbage rows must not count.
        row = jax.lax.broadcasted_iota(jnp.int32, (tile_n, c_pad), 0)
        row_ok = (row + pl.program_id(0) * tile_n) < num_rows
        contrib = jnp.where(row_ok, contrib, 0.0)

    # Per-tile partial-loss slab: fold rows 8-at-a-time with cross-vreg VPU adds only and
    # store real (8, c_pad) data (no XLU sublane reduce, no broadcast store). The scalar
    # reduce and the 1/N scaling happen in the wrapper.
    part = jnp.sum(contrib.reshape(tile_n // 8, 8, c_pad), axis=0)
    part_ref[...] = part.astype(part_ref.dtype)

    # updated confidence rows; exact one-divide-per-row normalization. Rows with no positive
    # candidate produce 0/0 -> NaN, matching the PyTorch reference behavior.
    r = posf * jnp.sqrt(pred_s * pred_w)
    r = r * (1.0 / jnp.sum(r, axis=1, keepdims=True))
    newt_ref[...] = r.astype(newt_ref.dtype)


def _choose_tile_n(n, c_pad, logit_bytes, conf_bytes, max_rows=1024,
                   vmem_block_budget=20 << 20):
    """Largest row tile (multiple of 8) whose double-buffered blocks PLUS the ~10 live
    (tile, c_pad) elementwise temporaries fit a budget that is also safe on v7x (64 MiB
    physical VMEM). Capped so that n >= 16 always yields >= 2 grid steps (both v7x TCs)."""
    per_row = 2 * (2 * logit_bytes + 2 * conf_bytes) * c_pad  # double-buffered in/out blocks
    per_row += 10 * 4 * c_pad                                 # live f32/i32 temporaries
    cap = max(8, min(max_rows, vmem_block_budget // per_row))
    cap -= cap % 8
    cap = max(cap, 8)
    if n >= 16:
        half = ((-(-n // 2)) + 7) // 8 * 8
        cap = min(cap, max(8, half))
    return min(cap, ((n + 7) // 8) * 8)


def proden_loss_prior_forward(output_w, output_s, confidence, index, update_target=True):
    """Functional forward pass. `confidence` is the module's state table, kept lane-padded
    to a multiple of 128 classes (padded columns are zero). Returns (loss, new_confidence)."""
    n, c = output_w.shape
    c_pad = ((c + 127) // 128) * 128

    if confidence.shape[1] != c_pad:
        # One-time compatibility pad. Create the table already padded (see __main__) so this
        # copy never runs and the donated-buffer in-place scatter is preserved.
        confidence = jnp.pad(confidence, ((0, 0), (0, c_pad - confidence.shape[1])))

    # Candidate-label rows for this batch: small (N, c_pad) gather kept as XLA glue.
    # TODO(synk): for large C this gather/scatter could be fused into the kernel via
    # num_scalar_prefetch=1 (index in SMEM) + per-row DMA from a pl.ANY confidence ref.
    target = confidence[index, :]

    logit_bytes = max(output_w.dtype.itemsize, output_s.dtype.itemsize)
    tile_n = _choose_tile_n(n, c_pad, logit_bytes, confidence.dtype.itemsize)
    num_tiles = pl.cdiv(n, tile_n)

    blk = pl.BlockSpec((tile_n, c_pad), lambda i: (i, 0))  # lane-dense; partial tails masked

    kernel = functools.partial(
        _proden_kernel,
        num_classes=c,
        num_rows=n,
        mask_rows=(n % tile_n != 0),
    )

    new_target, partials = pl.pallas_call(
        kernel,
        out_shape=(
            jax.ShapeDtypeStruct((n, c_pad), confidence.dtype),          # new_target rows
            jax.ShapeDtypeStruct((num_tiles * 8, c_pad), jnp.float32),   # per-tile loss partials
        ),
        grid_spec=pltpu.PrefetchScalarGridSpec(
            num_scalar_prefetch=0,
            grid=(num_tiles,),
            in_specs=[blk, blk, blk],
            out_specs=(
                blk,
                pl.BlockSpec((8, c_pad), lambda i: (i, 0)),
            ),
        ),
        compiler_params=pltpu.CompilerParams(
            dimension_semantics=("parallel",),       # no cross-tile state; megacore-friendly
            vmem_limit_bytes=32 * 1024 * 1024,       # safe on v5e / v6e / v7x
        ),
    )(output_w, output_s, target)

    loss = jnp.sum(partials) / n

    if update_target:
        new_confidence = confidence.at[index, :].set(new_target)
    else:
        new_confidence = confidence
    return loss, new_confidence


if __name__ == "__main__":
    key = jax.random.PRNGKey(0)
    k1, k2, k3, k4 = jax.random.split(key, 4)

    num_samples, num_classes, batch = 16, 10, 8
    c_pad = ((num_classes + 127) // 128) * 128

    # Deterministic synthetic partial-label confidence table (rows sum to 1, sparse candidate
    # mask, at least one positive per row), kept lane-padded at creation (padded classes = 0)
    # so the kernel reads/writes full 128-lane rows with no per-step pad/slice passes.
    mask = jax.random.bernoulli(k1, p=0.4, shape=(num_samples, num_classes)).astype(jnp.float32)
    mask = mask.at[:, 0].set(1.0)
    conf_core = mask / jnp.sum(mask, axis=1, keepdims=True)
    confidence = jnp.pad(conf_core, ((0, 0), (0, c_pad - num_classes)))

    output_w = jax.random.normal(k2, (batch, num_classes), dtype=jnp.float32)
    output_s = jax.random.normal(k3, (batch, num_classes), dtype=jnp.float32)
    index = jax.random.permutation(k4, num_samples)[:batch]

    # jit with the confidence table donated -> the scatter updates it in place in HBM.
    fwd = jax.jit(
        proden_loss_prior_forward,
        static_argnames=("update_target",),
        donate_argnums=(2,),
    )

    loss, new_confidence = fwd(output_w, output_s, confidence, index, update_target=True)
    jax.block_until_ready((loss, new_confidence))

    # sanity: loss is a finite scalar, updated rows still sum to 1, padded lanes stay zero
    assert loss.shape == () and bool(jnp.isfinite(loss))
    row_sums = jnp.sum(new_confidence[index, :num_classes], axis=1)
    assert bool(jnp.all(jnp.abs(row_sums - 1.0) < 1e-5))
    assert bool(jnp.all(new_confidence[:, num_classes:] == 0.0))

    print("KERNEL_OK")
</pallas_src>

<mosaic_0001>
module attributes {stable_mosaic.version = 11 : i64} {
  func.func @_proden_kernel(%arg0: i32, %arg1: memref<8x128xf32, #tpu.memory_space<vmem>>, %arg2: memref<8x128xf32, #tpu.memory_space<vmem>>, %arg3: memref<8x128xf32, #tpu.memory_space<vmem>>, %arg4: memref<8x128xf32, #tpu.memory_space<vmem>>, %arg5: memref<8x128xf32, #tpu.memory_space<vmem>>) attributes {dimension_semantics = [#tpu.dimension_semantics<parallel>], iteration_bounds = array<i64: 1>, scalar_prefetch = 0 : i64, scratch_operands = 0 : i64, tpu.core_type = #tpu.core_type<tc>, window_params = [{transform_indices = @transform_0, window_bounds = array<i64: 8, 128>}, {transform_indices = @transform_1, window_bounds = array<i64: 8, 128>}, {transform_indices = @transform_2, window_bounds = array<i64: 8, 128>}, {transform_indices = @transform_3, window_bounds = array<i64: 8, 128>}, {transform_indices = @transform_4, window_bounds = array<i64: 8, 128>}]} {
    %c0 = arith.constant 0 : index
    %c0_0 = arith.constant 0 : index
    %0 = vector.load %arg1[%c0, %c0_0] : memref<8x128xf32, #tpu.memory_space<vmem>>, vector<8x128xf32>
    %c0_1 = arith.constant 0 : index
    %c0_2 = arith.constant 0 : index
    %1 = vector.load %arg2[%c0_1, %c0_2] : memref<8x128xf32, #tpu.memory_space<vmem>>, vector<8x128xf32>
    %c0_3 = arith.constant 0 : index
    %c0_4 = arith.constant 0 : index
    %2 = vector.load %arg3[%c0_3, %c0_4] : memref<8x128xf32, #tpu.memory_space<vmem>>, vector<8x128xf32>
    %3 = tpu.iota {dimensions = array<i32: 1>} : vector<8x128xi32>
    %c10_i32 = arith.constant 10 : i32
    %4 = vector.broadcast %c10_i32 : i32 to vector<8x128xi32>
    %5 = arith.cmpi slt, %3, %4 : vector<8x128xi32>
    %cst = arith.constant -1.000000e+30 : f32
    %6 = vector.broadcast %cst : f32 to vector<8x128xf32>
    %7 = arith.select %5, %0, %6 : vector<8x128xi1>, vector<8x128xf32>
    %cst_5 = arith.constant -1.000000e+30 : f32
    %8 = vector.broadcast %cst_5 : f32 to vector<8x128xf32>
    %9 = arith.select %5, %1, %8 : vector<8x128xi1>, vector<8x128xf32>
    %cst_6 = arith.constant 0.000000e+00 : f32
    %10 = vector.broadcast %cst_6 : f32 to vector<8x128xf32>
    %11 = arith.select %5, %2, %10 : vector<8x128xi1>, vector<8x128xf32>
    %cst_7 = arith.constant dense<0xFF800000> : vector<8xf32>
    %12 = vector.multi_reduction <maximumf>, %7, %cst_7 [1] : vector<8x128xf32> to vector<8xf32>
    %13 = vector.shape_cast %12 : vector<8xf32> to vector<8x1xf32>
    %14 = vector.broadcast %13 : vector<8x1xf32> to vector<8x128xf32>
    %15 = arith.subf %7, %14 : vector<8x128xf32>
    %16 = math.exp %15 : vector<8x128xf32>
    %cst_8 = arith.constant dense<0.000000e+00> : vector<8xf32>
    %17 = vector.multi_reduction <add>, %16, %cst_8 [1] : vector<8x128xf32> to vector<8xf32>
    %18 = vector.shape_cast %17 : vector<8xf32> to vector<8x1xf32>
    %19 = math.log %18 : vector<8x1xf32>
    %20 = vector.broadcast %19 : vector<8x1xf32> to vector<8x128xf32>
    %21 = arith.subf %15, %20 : vector<8x128xf32>
    %cst_9 = arith.constant 1.000000e+00 : f32
    %22 = vector.broadcast %cst_9 : f32 to vector<8x1xf32>
    %23 = arith.divf %22, %18 : vector<8x1xf32>
    %24 = vector.broadcast %23 : vector<8x1xf32> to vector<8x128xf32>
    %25 = arith.mulf %16, %24 : vector<8x128xf32>
    %cst_10 = arith.constant dense<0xFF800000> : vector<8xf32>
    %26 = vector.multi_reduction <maximumf>, %9, %cst_10 [1] : vector<8x128xf32> to vector<8xf32>
    %27 = vector.shape_cast %26 : vector<8xf32> to vector<8x1xf32>
    %28 = vector.broadcast %27 : vector<8x1xf32> to vector<8x128xf32>
    %29 = arith.subf %9, %28 : vector<8x128xf32>
    %30 = math.exp %29 : vector<8x128xf32>
    %cst_11 = arith.constant dense<0.000000e+00> : vector<8xf32>
    %31 = vector.multi_reduction <add>, %30, %cst_11 [1] : vector<8x128xf32> to vector<8xf32>
    %32 = vector.shape_cast %31 : vector<8xf32> to vector<8x1xf32>
    %33 = math.log %32 : vector<8x1xf32>
    %34 = vector.broadcast %33 : vector<8x1xf32> to vector<8x128xf32>
    %35 = arith.subf %29, %34 : vector<8x128xf32>
    %cst_12 = arith.constant 1.000000e+00 : f32
    %36 = vector.broadcast %cst_12 : f32 to vector<8x1xf32>
    %37 = arith.divf %36, %32 : vector<8x1xf32>
    %38 = vector.broadcast %37 : vector<8x1xf32> to vector<8x128xf32>
    %39 = arith.mulf %30, %38 : vector<8x128xf32>
    %cst_13 = arith.constant 0.000000e+00 : f32
    %40 = vector.broadcast %cst_13 : f32 to vector<8x128xf32>
    %41 = arith.cmpf ogt, %11, %40 : vector<8x128xf32>
    %42 = arith.extui %41 : vector<8x128xi1> to vector<8x128xi32>
    %43 = arith.sitofp %42 : vector<8x128xi32> to vector<8x128xf32>
    %cst_14 = arith.constant 1.000000e+00 : f32
    %44 = vector.broadcast %cst_14 : f32 to vector<8x128xf32>
    %45 = arith.subf %44, %43 : vector<8x128xf32>
    %cst_15 = arith.constant 1.000000e+00 : f32
    %46 = vector.broadcast %cst_15 : f32 to vector<8x128xf32>
    %47 = arith.subf %46, %25 : vector<8x128xf32>
    %cst_16 = arith.constant 1.000000e+00 : f32
    %48 = vector.broadcast %cst_16 : f32 to vector<8x128xf32>
    %49 = arith.subf %48, %39 : vector<8x128xf32>
    %50 = arith.mulf %47, %49 : vector<8x128xf32>
    %51 = math.log %50 : vector<8x128xf32>
    %cst_17 = arith.constant 0.000000e+00 : f32
    %52 = vector.broadcast %cst_17 : f32 to vector<8x128xf32>
    %53 = arith.subf %52, %51 : vector<8x128xf32>
    %54 = arith.mulf %45, %53 : vector<8x128xf32>
    %cst_18 = arith.constant 1.000000e+00 : f32
    %55 = vector.broadcast %cst_18 : f32 to vector<8x128xf32>
    %56 = arith.select %41, %11, %55 : vector<8x128xi1>, vector<8x128xf32>
    %57 = math.log %56 : vector<8x128xf32>
    %58 = arith.mulf %11, %57 : vector<8x128xf32>
    %cst_19 = arith.constant 0.000000e+00 : f32
    %59 = vector.broadcast %cst_19 : f32 to vector<8x128xf32>
    %60 = arith.select %41, %58, %59 : vector<8x128xi1>, vector<8x128xf32>
    %cst_20 = arith.constant 2.000000e+00 : f32
    %61 = vector.broadcast %cst_20 : f32 to vector<8x128xf32>
    %62 = arith.mulf %61, %60 : vector<8x128xf32>
    %63 = arith.addf %21, %35 : vector<8x128xf32>
    %64 = arith.mulf %11, %63 : vector<8x128xf32>
    %65 = arith.subf %62, %64 : vector<8x128xf32>
    %66 = arith.addf %54, %65 : vector<8x128xf32>
    %67 = vector.shape_cast %66 : vector<8x128xf32> to vector<1x8x128xf32>
    %cst_21 = arith.constant dense<0.000000e+00> : vector<8x128xf32>
    %68 = vector.multi_reduction <add>, %67, %cst_21 [0] : vector<1x8x128xf32> to vector<8x128xf32>
    %c0_22 = arith.constant 0 : index
    %c0_23 = arith.constant 0 : index
    %69 = vector.load %arg5[%c0_22, %c0_23] : memref<8x128xf32, #tpu.memory_space<vmem>>, vector<8x128xf32>
    tpu.vector_store %arg5[%c0_22, %c0_23], %68 {strides = array<i32>} : memref<8x128xf32, #tpu.memory_space<vmem>>, vector<8x128xf32>,
    %70 = arith.mulf %39, %25 : vector<8x128xf32>
    %71 = math.sqrt %70 : vector<8x128xf32>
    %72 = arith.mulf %43, %71 : vector<8x128xf32>
    %cst_24 = arith.constant dense<0.000000e+00> : vector<8xf32>
    %73 = vector.multi_reduction <add>, %72, %cst_24 [1] : vector<8x128xf32> to vector<8xf32>
    %74 = vector.shape_cast %73 : vector<8xf32> to vector<8x1xf32>
    %cst_25 = arith.constant 1.000000e+00 : f32
    %75 = vector.broadcast %cst_25 : f32 to vector<8x1xf32>
    %76 = arith.divf %75, %74 : vector<8x1xf32>
    %77 = vector.broadcast %76 : vector<8x1xf32> to vector<8x128xf32>
    %78 = arith.mulf %72, %77 : vector<8x128xf32>
    %c0_26 = arith.constant 0 : index
    %c0_27 = arith.constant 0 : index
    %79 = vector.load %arg4[%c0_26, %c0_27] : memref<8x128xf32, #tpu.memory_space<vmem>>, vector<8x128xf32>
    tpu.vector_store %arg4[%c0_26, %c0_27], %78 {strides = array<i32>} : memref<8x128xf32, #tpu.memory_space<vmem>>, vector<8x128xf32>,
    return
  }
  func.func @transform_0(%arg0: i32) -> (i32, i32) {
    %c0_i32 = arith.constant 0 : i32
    %c0_i32_0 = arith.constant 0 : i32
    return %arg0, %c0_i32 : i32, i32
  }
  func.func @transform_1(%arg0: i32) -> (i32, i32) {
    %c0_i32 = arith.constant 0 : i32
    %c0_i32_0 = arith.constant 0 : i32
    return %arg0, %c0_i32 : i32, i32
  }
  func.func @transform_2(%arg0: i32) -> (i32, i32) {
    %c0_i32 = arith.constant 0 : i32
    %c0_i32_0 = arith.constant 0 : i32
    return %arg0, %c0_i32 : i32, i32
  }
  func.func @transform_3(%arg0: i32) -> (i32, i32) {
    %c0_i32 = arith.constant 0 : i32
    %c0_i32_0 = arith.constant 0 : i32
    return %arg0, %c0_i32 : i32, i32
  }
  func.func @transform_4(%arg0: i32) -> (i32, i32) {
    %c0_i32 = arith.constant 0 : i32
    %c0_i32_0 = arith.constant 0 : i32
    return %arg0, %c0_i32 : i32, i32
  }
}

</mosaic_0001>

<bundles_post_ra>
// kernel: proden_loss_prior_forward.1
= control target key start
LH: loop header
LB: loop body
LE: loop exit
PB: predicated region body
PF: predicated region fallthrough
CT: control target
= control target key end

     0   :  { %v19_v0 = vlaneseq  ;;  %v163_v56 = vmov 0.0   ;;  %s218_s0 = inlined_call_operand.vmem [shape: f32[8,10], index: 0, kind: input, shape index: {}]   ;;  %s219_s1 = inlined_call_operand.vmem [shape: f32[8,10], index: 1, kind: input, shape index: {}]   ;;  %s220_s2 = inlined_call_operand.vmem [shape: f32[8,128], index: 2, kind: input, shape index: {}]   ;;  %s221_s4 = inlined_call_operand.vmem [shape: f32[8,128], index: 4, kind: output, shape index: {1}]   ;;  %s222_s3 = inlined_call_operand.vmem [shape: f32[8,128], index: 3, kind: output, shape index: {0}]  }
   0x1   :  { %v16_v1 = vld [vmem:[%s218_s0] sm:$0xff] }
   0x2   :  { %v20_v2 = vand.u32 127, %v19_v0  ;;  %v17_v4 = vld [vmem:[%s219_s1] sm:$0xff] }
   0x3   :  { %v18_v15 = vld [vmem:[%s220_s2] sm:$0xff] }
   0x4   :  { %vm21_vm0 = vcmp.lt.s32.totalorder %v20_v2, 10 }
   0x5   :  { %v22_v3 = vsel %vm21_vm0, %v16_v1, -1e+30  ;;  %v23_v5 = vsel %vm21_vm0, %v17_v4, -1e+30  ;;  %v24_v19 = vsel %vm21_vm0, %v18_v15, 0.0 }
   0x6   :  { %25 = vmax.xlane.f32.xlu0 %v22_v3  ;;  %vm77_vm1 = vcmp.gt.f32.partialorder %v24_v19, 0.0 }
   0x7   :  { %v88_v24 = vsel %vm77_vm1, %v24_v19, 1.0  ;;  %v141_v57 = vsel %vm77_vm1, 1.0, %v163_v56 }
   0x8   :  { %v80_v62 = vsub.f32 1.0, %v141_v57 }
   0xe   :  { %51 = vmax.xlane.f32.xlu0 %v23_v5 }
  0x79   :  { %v26_v6 = vpop.xlane.xlu0 %25 }
  0x7a   :  { %v197_v7 = vsub.f32 %v22_v3, %v26_v6 }
  0x7c   :  { %v28_v8 = vmul.f32 1.442695, %v197_v7 }
  0x7e   :  { %143 = vpow2.f32 %v28_v8 }
  0x81   :  { %v52_v9 = vpop.xlane.xlu0 %51 }
  0x82   :  { %v200_v10 = vsub.f32 %v23_v5, %v52_v9 }
  0x84   :  { %v144_v11 = vpop.eup %143  ;;  %v54_v12 = vmul.f32 1.442695, %v200_v10 }
  0x85   :  { %30 = vadd.xlane.f32.xlu1 %v144_v11 }
  0x86   :  { %145 = vpow2.f32 %v54_v12 }
  0x8c   :  { %v146_v13 = vpop.eup %145 }
  0x8d   :  { %56 = vadd.xlane.f32.xlu1 %v146_v13 }
  0xf8   :  { %v31_v14 = vpop.xlane.xlu1 %30 }
  0xf9   :  { %147 = vrcp.f32 %v31_v14  ;;  %v46_v25 = vand.u32 2147483648, %v31_v14  ;;  %vm40_vm3 = vweird.f32 %v31_v14  ;;  %v44_v27 = vand.u32 2147483647, %v31_v14 }
  0xfb   :  { %v47_v31 = vor.u32 1.1754944e-38, %v46_v25  ;;  %vm45_vm6 = vcmp.eq.f32.partialorder %v44_v27, 8.507059e+37 }
  0xff   :  { %v148_v16 = vpop.eup %147 }
 0x100   :  { %v57_v17 = vpop.xlane.xlu1 %56  ;;  %v36_v18 = vmul.f32 %v148_v16, %v31_v14  ;;  %vm41_vm2 = vweird.f32 %v148_v16 }
 0x101   :  { %149 = vrcp.f32 %v57_v17  ;;  %vm42_vm4 = vmor %vm40_vm3, %vm41_vm2  ;;  %v72_v30 = vand.u32 2147483648, %v57_v17  ;;  %v70_v33 = vand.u32 2147483647, %v57_v17  ;;  %vm66_vm7 = vweird.f32 %v57_v17 }
 0x102   :  { %v37_v20 = vsub.f32 1.0, %v36_v18  ;;  %151 = vlog2.f32 %v88_v24 }
 0x103   :  { %153 = vlog2.f32 %v57_v17  ;;  %v73_v36 = vor.u32 1.1754944e-38, %v72_v30  ;;  %vm71_vm9 = vcmp.eq.f32.partialorder %v70_v33, 8.507059e+37 }
 0x104   :  { %v38_v21 = vmul.f32 %v148_v16, %v37_v20  ;;  %155 = vlog2.f32 %v31_v14 }
 0x106   :  { %v39_v23 = vadd.f32 %v148_v16, %v38_v21 }
 0x107   :  { %v150_v22 = vpop.eup %149 }
 0x108   :  { %v62_v26 = vmul.f32 %v150_v22, %v57_v17  ;;  %v43_v29 = vsel %vm42_vm4, %v148_v16, %v39_v23  ;;  %vm67_vm5 = vweird.f32 %v150_v22  ;;  %v152_v37 = vpop.eup %151 }
 0x109   :  { %v48_v34 = vsel %vm45_vm6, %v47_v31, %v43_v29  ;;  %vm68_vm8 = vmor %vm66_vm7, %vm67_vm5  ;;  %v154_v39 = vpop.eup %153  ;;  %v90_v48 = vmul.f32 0.6931472, %v152_v37 }
 0x10a   :  { %v63_v28 = vsub.f32 1.0, %v62_v26  ;;  %v50_v40 = vmul.f32 %v144_v11, %v48_v34  ;;  %v156_v43 = vpop.eup %155  ;;  %v59_v44 = vmul.f32 0.6931472, %v154_v39 }
 0x10b   :  { %v33_v49 = vmul.f32 0.6931472, %v156_v43  ;;  %v91_v52 = vmul.f32 %v90_v48, %v24_v19 }
 0x10c   :  { %v64_v32 = vmul.f32 %v150_v22, %v63_v28  ;;  %v81_v47 = vsub.f32 1.0, %v50_v40  ;;  %v60_v51 = vsub.f32 %v200_v10, %v59_v44 }
 0x10d   :  { %v34_v53 = vsub.f32 %v197_v7, %v33_v49  ;;  %v92_v58 = vsel %vm77_vm1, %v91_v52, 0.0 }
 0x10e   :  { %v65_v35 = vadd.f32 %v150_v22, %v64_v32  ;;  %v93_v63 = vmul.f32 2.0, %v92_v58 }
 0x10f   :  { %v94_v55 = vadd.f32 %v60_v51, %v34_v53 }
 0x110   :  { %v69_v38 = vsel %vm68_vm8, %v150_v22, %v65_v35 }
 0x111   :  { %v74_v41 = vsel %vm71_vm9, %v73_v36, %v69_v38  ;;  %v95_v1 = vmul.f32 %v94_v55, %v24_v19 }
 0x112   :  { %v76_v42 = vmul.f32 %v146_v13, %v74_v41 }
 0x113   :  { %v96_v6 = vsub.f32 %v93_v63, %v95_v1 }
 0x114   :  { %v100_v45 = vmul.f32 %v76_v42, %v50_v40  ;;  %v82_v46 = vsub.f32 1.0, %v76_v42 }
 0x116   :  { %157 = vrsqrt.f32 %v100_v45  ;;  %v83_v50 = vmul.f32 %v82_v46, %v81_v47  ;;  %vm108_vm10 = vcmp.eq.f32.partialorder %v100_v45, inf  ;;  %v111_v10 = vand.u32 2147483648, %v100_v45 }
 0x117   :  { %vm110_vm11 = vcmp.eq.f32.partialorder %v100_v45, 0.0 }
 0x118   :  { %159 = vlog2.f32 %v83_v50 }
 0x11c   :  { %v158_v54 = vpop.eup %157 }
 0x11d   :  { %v102_v59 = vmul.f32 %v158_v54, %v100_v45 }
 0x11e   :  { %v160_v60 = vpop.eup %159 }
 0x11f   :  { %v103_v61 = vmul.f32 %v158_v54, %v102_v59  ;;  %v85_v0 = vmul.f32 0.6931472, %v160_v60 }
 0x121   :  { %v104_v2 = vmul.f32 0.5, %v103_v61  ;;  %v86_v3 = vsub.f32 0.0, %v85_v0 }
 0x123   :  { %v105_v4 = vsub.f32 1.5, %v104_v2  ;;  %v87_v5 = vmul.f32 %v86_v3, %v80_v62 }
 0x125   :  { %v106_v7 = vmul.f32 %v158_v54, %v105_v4  ;;  %v97_v8 = vadd.f32 %v96_v6, %v87_v5 }
 0x127   :  { %v107_v9 = vmul.f32 %v106_v7, %v100_v45  ;;  %99 = vst [vmem:[%s221_s4] sm:$0xff] %v97_v8 }
 0x129   :  { %v109_v11 = vsel %vm108_vm10, %v100_v45, %v107_v9 }
 0x12a   :  { %v112_v12 = vsel %vm110_vm11, %v111_v10, %v109_v11 }
 0x12b   :  { %v113_v13 = vmul.f32 %v141_v57, %v112_v12 }
 0x12d   :  { %114 = vadd.xlane.f32.xlu2 %v113_v13 }
 0x1a0   :  { %v115_v14 = vpop.xlane.xlu2 %114 }
 0x1a1   :  { %161 = vrcp.f32 %v115_v14  ;;  %v127_v18 = vand.u32 2147483648, %v115_v14  ;;  %v125_v20 = vand.u32 2147483647, %v115_v14  ;;  %vm121_vm13 = vweird.f32 %v115_v14 }
 0x1a3   :  { %v128_v22 = vor.u32 1.1754944e-38, %v127_v18  ;;  %vm126_vm15 = vcmp.eq.f32.partialorder %v125_v20, 8.507059e+37 }
 0x1a7   :  { %v162_v15 = vpop.eup %161 }
 0x1a8   :  { %v117_v16 = vmul.f32 %v162_v15, %v115_v14  ;;  %vm122_vm12 = vweird.f32 %v162_v15 }
 0x1a9   :  { %vm123_vm14 = vmor %vm121_vm13, %vm122_vm12 }
 0x1aa   :  { %v118_v17 = vsub.f32 1.0, %v117_v16 }
 0x1ac   :  { %v119_v19 = vmul.f32 %v162_v15, %v118_v17 }
 0x1ae   :  { %v120_v21 = vadd.f32 %v162_v15, %v119_v19 }
 0x1b0   :  { %v124_v23 = vsel %vm123_vm14, %v162_v15, %v120_v21 }
 0x1b1   :  { %v129_v24 = vsel %vm126_vm15, %v128_v22, %v124_v23 }
 0x1b2   :  { %v131_v25 = vmul.f32 %v129_v24, %v113_v13 }
 0x1b4   :  { %132 = vst [vmem:[%s222_s3] sm:$0xff] %v131_v25 }

</bundles_post_ra>
